<compile_context>
chip_gen: v5e
topology: v5e:2x2
jax: 0.10.0
libtpu: 0.0.40
codegen_flags: <defaults>
</compile_context>

<pallas_src>
import jax
import jax.numpy as jnp
from jax.experimental import pallas as pl
from jax.experimental.pallas import tpu as pltpu


def _round_up(x, m):
    return (x + m - 1) // m * m


# ---------------------------------------------------------------------------
# Kernel: full AE forward on one (TB, D_pad) batch tile, weights resident.
# ---------------------------------------------------------------------------
def ae_kernel(x_ref,
              w1_ref, b1_ref,
              w2_ref, b2_ref,
              w3_ref, b3_ref,
              w4_ref, b4_ref,
              out_ref):
    # encode:  h  = x @ W1 + b1           (no activation, as in the PyTorch code)
    #          z  = sigmoid(h @ W2 + b2)
    # decode:  h2 = z @ W3 + b3           (no activation)
    #          y  = sigmoid(h2 @ W4 + b4)
    x = x_ref[...].astype(jnp.bfloat16)                       # MXU operand dtype

    h = jnp.dot(x, w1_ref[...],
                preferred_element_type=jnp.float32) + b1_ref[...]
    pre2 = jnp.dot(h.astype(jnp.bfloat16), w2_ref[...],
                   preferred_element_type=jnp.float32) + b2_ref[...]
    z = jax.nn.sigmoid(pre2)                                   # f32 on the EUP
    h2 = jnp.dot(z.astype(jnp.bfloat16), w3_ref[...],
                 preferred_element_type=jnp.float32) + b3_ref[...]
    pre4 = jnp.dot(h2.astype(jnp.bfloat16), w4_ref[...],
                   preferred_element_type=jnp.float32) + b4_ref[...]
    out_ref[...] = jax.nn.sigmoid(pre4).astype(out_ref.dtype)


# ---------------------------------------------------------------------------
# Wrapper: padding, bf16 weight cast, batch grid, output un-padding.
# ---------------------------------------------------------------------------
@jax.jit
def ae_forward(x, params):
    """x: (B, S1, S2) float32. Returns reconstruction with the same shape."""
    B, S1, S2 = x.shape
    D = S1 * S2
    (w1, b1), (w2, b2), (w3, b3), (w4, b4) = params
    h_dim, z_dim = w1.shape[1], w2.shape[1]

    # Lane/MXU-friendly padded sizes.
    D_pad = _round_up(D, 128)
    h_pad = _round_up(h_dim, 128)
    z_pad = _round_up(z_dim, 128)
    TB = min(256, _round_up(B, 8))          # batch tile (sublane-aligned, <= 256)
    B_pad = _round_up(B, TB)
    grid = (B_pad // TB,)

    # Flatten + zero-pad input; zero-pad weights/biases (padded lanes are inert:
    # padded W rows are zero so sigmoid(0)=0.5 on padded z lanes never propagates).
    xf = jnp.pad(x.reshape(B, D).astype(jnp.float32),
                 ((0, B_pad - B), (0, D_pad - D)))

    def pad_w(w, r, c):
        return jnp.pad(w, ((0, r - w.shape[0]), (0, c - w.shape[1]))
                       ).astype(jnp.bfloat16)

    def pad_b(b, c):
        return jnp.pad(b, ((0, 0), (0, c - b.shape[1]))).astype(jnp.float32)

    w1p, b1p = pad_w(w1, D_pad, h_pad), pad_b(b1, h_pad)
    w2p, b2p = pad_w(w2, h_pad, z_pad), pad_b(b2, z_pad)
    w3p, b3p = pad_w(w3, z_pad, h_pad), pad_b(b3, h_pad)
    w4p, b4p = pad_w(w4, h_pad, D_pad), pad_b(b4, D_pad)

    def resident(shape):                     # whole array, pinned across the grid
        return pl.BlockSpec(shape, lambda i: (0, 0))

    flops = 2 * B_pad * (D_pad * h_pad + h_pad * z_pad
                         + z_pad * h_pad + h_pad * D_pad)
    transcendentals = B_pad * (z_pad + D_pad)                  # the two sigmoids
    bytes_accessed = (B_pad * D_pad * 4 * 2                    # x in + y out (f32)
                      + 2 * (D_pad * h_pad * 2 + h_pad * z_pad * 2)   # bf16 weights
                      + 4 * (2 * h_pad + z_pad + D_pad))              # f32 biases

    out = pl.pallas_call(
        ae_kernel,
        out_shape=jax.ShapeDtypeStruct((B_pad, D_pad), jnp.float32),
        grid=grid,
        in_specs=[
            pl.BlockSpec((TB, D_pad), lambda i: (i, 0)),       # batch-tiled x
            resident(w1p.shape), resident(b1p.shape),
            resident(w2p.shape), resident(b2p.shape),
            resident(w3p.shape), resident(b3p.shape),
            resident(w4p.shape), resident(b4p.shape),
        ],
        out_specs=pl.BlockSpec((TB, D_pad), lambda i: (i, 0)), # batch-tiled y
        compiler_params=pltpu.CompilerParams(
            dimension_semantics=("parallel",)),
        cost_estimate=pl.CostEstimate(
            flops=flops,
            transcendentals=transcendentals,
            bytes_accessed=bytes_accessed),
    )(xf, w1p, b1p, w2p, b2p, w3p, b3p, w4p, b4p)

    return out[:B, :D].reshape(B, S1, S2)


# ---------------------------------------------------------------------------
# Init (matches the PyTorch module) and references.
# ---------------------------------------------------------------------------
def xavier_uniform(key, fan_in, fan_out, gain=1.0):
    bound = gain * jnp.sqrt(6.0 / (fan_in + fan_out))
    return jax.random.uniform(key, (fan_in, fan_out), jnp.float32, -bound, bound)


def linear_default_bias(key, fan_in, fan_out):
    bound = 1.0 / jnp.sqrt(fan_in)
    return jax.random.uniform(key, (1, fan_out), jnp.float32, -bound, bound)


def init_params(key, D, h_dim, z_dim):
    ks = jax.random.split(key, 8)
    gain = jnp.sqrt(2.0)
    w1 = xavier_uniform(ks[0], D, h_dim, gain)       # stored as (in, out) = W^T
    b1 = linear_default_bias(ks[1], D, h_dim)
    w2 = xavier_uniform(ks[2], h_dim, z_dim, gain)
    b2 = linear_default_bias(ks[3], h_dim, z_dim)
    w3 = xavier_uniform(ks[4], z_dim, h_dim, 1.0)
    b3 = linear_default_bias(ks[5], z_dim, h_dim)
    w4 = xavier_uniform(ks[6], h_dim, D, 1.0)
    b4 = linear_default_bias(ks[7], h_dim, D)
    return ((w1, b1), (w2, b2), (w3, b3), (w4, b4))


def ae_forward_ref(x, params, bf16_matmuls=False):
    """Pure-JAX reference. bf16_matmuls=True mimics the kernel's MXU dtype."""
    B, S1, S2 = x.shape
    xf = x.reshape(B, S1 * S2)
    (w1, b1), (w2, b2), (w3, b3), (w4, b4) = params
    cast = (lambda a: a.astype(jnp.bfloat16)) if bf16_matmuls else (lambda a: a)
    dot = lambda a, b: jnp.dot(cast(a), cast(b),
                               preferred_element_type=jnp.float32)
    h = dot(xf, w1) + b1
    z = jax.nn.sigmoid(dot(h, w2) + b2)
    h2 = dot(z, w3) + b3
    y = jax.nn.sigmoid(dot(h2, w4) + b4)
    return y.reshape(x.shape)


if __name__ == "__main__":
    # shape = (batch, seq, features) as the PyTorch module expects.
    S1, S2 = 8, 16                 # D = 128
    h_dim, z_dim = 32, 16
    D = S1 * S2

    key = jax.random.PRNGKey(0)
    kx, kx2, kp = jax.random.split(key, 3)
    params = init_params(kp, D, h_dim, z_dim)

    ok = True
    for xk, B in ((kx, 2), (kx2, 5)):          # aligned + non-aligned batch
        x = jax.random.normal(xk, (B, S1, S2), jnp.float32)
        out = jax.block_until_ready(ae_forward(x, params))
        assert out.shape == x.shape

        ref_bf16 = ae_forward_ref(x, params, bf16_matmuls=True)
        ref_f32 = ae_forward_ref(x, params, bf16_matmuls=False)
        ok &= bool(jnp.allclose(out, ref_bf16, atol=5e-3, rtol=5e-3))
        ok &= bool(jnp.allclose(out, ref_f32, atol=5e-2, rtol=0))

    assert ok
    print("KERNEL_OK")
</pallas_src>

<mosaic_0001>
module attributes {stable_mosaic.version = 11 : i64} {
  func.func @ae_kernel(%arg0: i32, %arg1: memref<8x128xf32, #tpu.memory_space<vmem>>, %arg2: memref<128x128xbf16, #tpu.memory_space<vmem>>, %arg3: memref<1x128xf32, #tpu.memory_space<vmem>>, %arg4: memref<128x128xbf16, #tpu.memory_space<vmem>>, %arg5: memref<1x128xf32, #tpu.memory_space<vmem>>, %arg6: memref<128x128xbf16, #tpu.memory_space<vmem>>, %arg7: memref<1x128xf32, #tpu.memory_space<vmem>>, %arg8: memref<128x128xbf16, #tpu.memory_space<vmem>>, %arg9: memref<1x128xf32, #tpu.memory_space<vmem>>, %arg10: memref<8x128xf32, #tpu.memory_space<vmem>>) attributes {dimension_semantics = [#tpu.dimension_semantics<parallel>], iteration_bounds = array<i64: 1>, scalar_prefetch = 0 : i64, scratch_operands = 0 : i64, tpu.core_type = #tpu.core_type<tc>, window_params = [{transform_indices = @transform_0, window_bounds = array<i64: 8, 128>}, {pipeline_mode = #tpu.pipeline_mode<synchronous>, transform_indices = @transform_1, window_bounds = array<i64: 128, 128>}, {pipeline_mode = #tpu.pipeline_mode<synchronous>, transform_indices = @transform_2, window_bounds = array<i64: 1, 128>}, {pipeline_mode = #tpu.pipeline_mode<synchronous>, transform_indices = @transform_3, window_bounds = array<i64: 128, 128>}, {pipeline_mode = #tpu.pipeline_mode<synchronous>, transform_indices = @transform_4, window_bounds = array<i64: 1, 128>}, {pipeline_mode = #tpu.pipeline_mode<synchronous>, transform_indices = @transform_5, window_bounds = array<i64: 128, 128>}, {pipeline_mode = #tpu.pipeline_mode<synchronous>, transform_indices = @transform_6, window_bounds = array<i64: 1, 128>}, {pipeline_mode = #tpu.pipeline_mode<synchronous>, transform_indices = @transform_7, window_bounds = array<i64: 128, 128>}, {pipeline_mode = #tpu.pipeline_mode<synchronous>, transform_indices = @transform_8, window_bounds = array<i64: 1, 128>}, {transform_indices = @transform_9, window_bounds = array<i64: 8, 128>}]} {
    %c0 = arith.constant 0 : index
    %c0_0 = arith.constant 0 : index
    %0 = vector.load %arg1[%c0, %c0_0] : memref<8x128xf32, #tpu.memory_space<vmem>>, vector<8x128xf32>
    %1 = arith.truncf %0 : vector<8x128xf32> to vector<8x128xbf16>
    %c0_1 = arith.constant 0 : index
    %c0_2 = arith.constant 0 : index
    %2 = vector.load %arg2[%c0_1, %c0_2] : memref<128x128xbf16, #tpu.memory_space<vmem>>, vector<128x128xbf16>
    %cst = arith.constant dense<0.000000e+00> : vector<8x128xf32>
    %3 = tpu.matmul %1, %2, %cst {dimension_numbers = #tpu.dot_dimension_numbers<[1], [0], [0], [1], [0, 0, 1, 1], [], []>} : vector<8x128xbf16>, vector<128x128xbf16>, vector<8x128xf32> -> vector<8x128xf32>
    %c0_3 = arith.constant 0 : index
    %c0_4 = arith.constant 0 : index
    %4 = vector.load %arg3[%c0_3, %c0_4] : memref<1x128xf32, #tpu.memory_space<vmem>>, vector<1x128xf32>
    %5 = vector.broadcast %4 : vector<1x128xf32> to vector<8x128xf32>
    %6 = arith.addf %3, %5 : vector<8x128xf32>
    %7 = arith.truncf %6 : vector<8x128xf32> to vector<8x128xbf16>
    %c0_5 = arith.constant 0 : index
    %c0_6 = arith.constant 0 : index
    %8 = vector.load %arg4[%c0_5, %c0_6] : memref<128x128xbf16, #tpu.memory_space<vmem>>, vector<128x128xbf16>
    %cst_7 = arith.constant dense<0.000000e+00> : vector<8x128xf32>
    %9 = tpu.matmul %7, %8, %cst_7 {dimension_numbers = #tpu.dot_dimension_numbers<[1], [0], [0], [1], [0, 0, 1, 1], [], []>} : vector<8x128xbf16>, vector<128x128xbf16>, vector<8x128xf32> -> vector<8x128xf32>
    %c0_8 = arith.constant 0 : index
    %c0_9 = arith.constant 0 : index
    %10 = vector.load %arg5[%c0_8, %c0_9] : memref<1x128xf32, #tpu.memory_space<vmem>>, vector<1x128xf32>
    %11 = vector.broadcast %10 : vector<1x128xf32> to vector<8x128xf32>
    %12 = arith.addf %9, %11 : vector<8x128xf32>
    %13 = arith.negf %12 : vector<8x128xf32>
    %14 = math.exp %13 : vector<8x128xf32>
    %cst_10 = arith.constant 1.000000e+00 : f32
    %15 = vector.broadcast %cst_10 : f32 to vector<8x128xf32>
    %16 = arith.addf %15, %14 : vector<8x128xf32>
    %17 = arith.divf %15, %16 : vector<8x128xf32>
    %18 = arith.truncf %17 : vector<8x128xf32> to vector<8x128xbf16>
    %c0_11 = arith.constant 0 : index
    %c0_12 = arith.constant 0 : index
    %19 = vector.load %arg6[%c0_11, %c0_12] : memref<128x128xbf16, #tpu.memory_space<vmem>>, vector<128x128xbf16>
    %cst_13 = arith.constant dense<0.000000e+00> : vector<8x128xf32>
    %20 = tpu.matmul %18, %19, %cst_13 {dimension_numbers = #tpu.dot_dimension_numbers<[1], [0], [0], [1], [0, 0, 1, 1], [], []>} : vector<8x128xbf16>, vector<128x128xbf16>, vector<8x128xf32> -> vector<8x128xf32>
    %c0_14 = arith.constant 0 : index
    %c0_15 = arith.constant 0 : index
    %21 = vector.load %arg7[%c0_14, %c0_15] : memref<1x128xf32, #tpu.memory_space<vmem>>, vector<1x128xf32>
    %22 = vector.broadcast %21 : vector<1x128xf32> to vector<8x128xf32>
    %23 = arith.addf %20, %22 : vector<8x128xf32>
    %24 = arith.truncf %23 : vector<8x128xf32> to vector<8x128xbf16>
    %c0_16 = arith.constant 0 : index
    %c0_17 = arith.constant 0 : index
    %25 = vector.load %arg8[%c0_16, %c0_17] : memref<128x128xbf16, #tpu.memory_space<vmem>>, vector<128x128xbf16>
    %cst_18 = arith.constant dense<0.000000e+00> : vector<8x128xf32>
    %26 = tpu.matmul %24, %25, %cst_18 {dimension_numbers = #tpu.dot_dimension_numbers<[1], [0], [0], [1], [0, 0, 1, 1], [], []>} : vector<8x128xbf16>, vector<128x128xbf16>, vector<8x128xf32> -> vector<8x128xf32>
    %c0_19 = arith.constant 0 : index
    %c0_20 = arith.constant 0 : index
    %27 = vector.load %arg9[%c0_19, %c0_20] : memref<1x128xf32, #tpu.memory_space<vmem>>, vector<1x128xf32>
    %28 = vector.broadcast %27 : vector<1x128xf32> to vector<8x128xf32>
    %29 = arith.addf %26, %28 : vector<8x128xf32>
    %30 = arith.negf %29 : vector<8x128xf32>
    %31 = math.exp %30 : vector<8x128xf32>
    %cst_21 = arith.constant 1.000000e+00 : f32
    %32 = vector.broadcast %cst_21 : f32 to vector<8x128xf32>
    %33 = arith.addf %32, %31 : vector<8x128xf32>
    %34 = arith.divf %32, %33 : vector<8x128xf32>
    %c0_22 = arith.constant 0 : index
    %c0_23 = arith.constant 0 : index
    %35 = vector.load %arg10[%c0_22, %c0_23] : memref<8x128xf32, #tpu.memory_space<vmem>>, vector<8x128xf32>
    tpu.vector_store %arg10[%c0_22, %c0_23], %34 {strides = array<i32>} : memref<8x128xf32, #tpu.memory_space<vmem>>, vector<8x128xf32>,
    return
  }
  func.func @transform_0(%arg0: i32) -> (i32, i32) {
    %c0_i32 = arith.constant 0 : i32
    %c0_i32_0 = arith.constant 0 : i32
    return %arg0, %c0_i32 : i32, i32
  }
  func.func @transform_1(%arg0: i32) -> (i32, i32) {
    %c0_i32 = arith.constant 0 : i32
    %c0_i32_0 = arith.constant 0 : i32
    %c0_i32_1 = arith.constant 0 : i32
    return %c0_i32, %c0_i32_0 : i32, i32
  }
  func.func @transform_2(%arg0: i32) -> (i32, i32) {
    %c0_i32 = arith.constant 0 : i32
    %c0_i32_0 = arith.constant 0 : i32
    %c0_i32_1 = arith.constant 0 : i32
    return %c0_i32, %c0_i32_0 : i32, i32
  }
  func.func @transform_3(%arg0: i32) -> (i32, i32) {
    %c0_i32 = arith.constant 0 : i32
    %c0_i32_0 = arith.constant 0 : i32
    %c0_i32_1 = arith.constant 0 : i32
    return %c0_i32, %c0_i32_0 : i32, i32
  }
  func.func @transform_4(%arg0: i32) -> (i32, i32) {
    %c0_i32 = arith.constant 0 : i32
    %c0_i32_0 = arith.constant 0 : i32
    %c0_i32_1 = arith.constant 0 : i32
    return %c0_i32, %c0_i32_0 : i32, i32
  }
  func.func @transform_5(%arg0: i32) -> (i32, i32) {
    %c0_i32 = arith.constant 0 : i32
    %c0_i32_0 = arith.constant 0 : i32
    %c0_i32_1 = arith.constant 0 : i32
    return %c0_i32, %c0_i32_0 : i32, i32
  }
  func.func @transform_6(%arg0: i32) -> (i32, i32) {
    %c0_i32 = arith.constant 0 : i32
    %c0_i32_0 = arith.constant 0 : i32
    %c0_i32_1 = arith.constant 0 : i32
    return %c0_i32, %c0_i32_0 : i32, i32
  }
  func.func @transform_7(%arg0: i32) -> (i32, i32) {
    %c0_i32 = arith.constant 0 : i32
    %c0_i32_0 = arith.constant 0 : i32
    %c0_i32_1 = arith.constant 0 : i32
    return %c0_i32, %c0_i32_0 : i32, i32
  }
  func.func @transform_8(%arg0: i32) -> (i32, i32) {
    %c0_i32 = arith.constant 0 : i32
    %c0_i32_0 = arith.constant 0 : i32
    %c0_i32_1 = arith.constant 0 : i32
    return %c0_i32, %c0_i32_0 : i32, i32
  }
  func.func @transform_9(%arg0: i32) -> (i32, i32) {
    %c0_i32 = arith.constant 0 : i32
    %c0_i32_0 = arith.constant 0 : i32
    return %arg0, %c0_i32 : i32, i32
  }
}

</mosaic_0001>

<bundles_post_ra>
// kernel: ae_forward.1
= control target key start
LH: loop header
LB: loop body
LE: loop exit
PB: predicated region body
PF: predicated region fallthrough
CT: control target
= control target key end

     0   :  { %s742_s1 = inlined_call_operand.vmem [shape: bf16[128,128], index: 1, kind: input, shape index: {}]   ;;  %s743_s3 = inlined_call_operand.vmem [shape: bf16[128,128], index: 3, kind: input, shape index: {}]   ;;  %s744_s2 = inlined_call_operand.vmem [shape: f32[1,128], index: 2, kind: input, shape index: {}]   ;;  %s745_s0 = inlined_call_operand.vmem [shape: f32[8,128], index: 0, kind: input, shape index: {}]   ;;  %s746_s4 = inlined_call_operand.vmem [shape: f32[1,128], index: 4, kind: input, shape index: {}]   ;;  %s747_s6 = inlined_call_operand.vmem [shape: f32[1,128], index: 6, kind: input, shape index: {}]   ;;  %s748_s5 = inlined_call_operand.vmem [shape: bf16[128,128], index: 5, kind: input, shape index: {}]   ;;  %s749_s7 = inlined_call_operand.vmem [shape: bf16[128,128], index: 7, kind: input, shape index: {}]   ;;  %s750_s8 = inlined_call_operand.vmem [shape: f32[1,128], index: 8, kind: input, shape index: {}]   ;;  %s751_s9 = inlined_call_operand.vmem [shape: f32[8,128], index: 9, kind: output, shape index: {}]  }
   0x1   :  { %v541_v0 = vld [vmem:[%s742_s1 + $0x38] sm:$0xff]  ;;  %v540_v1 = vld [vmem:[%s742_s1 + $0x30] sm:$0xff]  ;;  %v539_v4 = vld [vmem:[%s742_s1 + $0x28] sm:$0xff] }
   0x2   :  { %102 = vmatpush.bf16.msra.mxu0 %v541_v0  ;;  %v549_v2 = vld [vmem:[%s743_s3 + $0x38] sm:$0xff]  ;;  %v548_v3 = vld [vmem:[%s743_s3 + $0x30] sm:$0xff]  ;;  %v547_v5 = vld [vmem:[%s743_s3 + $0x28] sm:$0xff] }
   0x3   :  { %184 = vmatpush.bf16.msra.mxu1 %v549_v2  ;;  %v538_v6 = vld [vmem:[%s742_s1 + $0x20] sm:$0xff]  ;;  %v537_v8 = vld [vmem:[%s742_s1 + $0x18] sm:$0xff]  ;;  %v536_v10 = vld [vmem:[%s742_s1 + $0x10] sm:$0xff] }
   0x4   :  { %v546_v7 = vld [vmem:[%s743_s3 + $0x20] sm:$0xff]  ;;  %v545_v9 = vld [vmem:[%s743_s3 + $0x18] sm:$0xff]  ;;  %v544_v11 = vld [vmem:[%s743_s3 + $0x10] sm:$0xff] }
   0x5   :  { %v535_v12 = vld [vmem:[%s742_s1 + $0x8] sm:$0xff]  ;;  %v534_v14 = vld [vmem:[%s742_s1] sm:$0xff]  ;;  %v557_v23 = vld [vmem:[%s748_s5 + $0x38] sm:$0xff] }
   0x6   :  { %103 = vmatpush.bf16.msra.mxu0 %v540_v1  ;;  %v543_v13 = vld [vmem:[%s743_s3 + $0x8] sm:$0xff]  ;;  %v32_v15 = vld [vmem:[%s745_s0] sm:$0xff]  ;;  %285 = vmatpush.bf16.msra.mxu2 %v557_v23  ;;  %v556_v24 = vld [vmem:[%s748_s5 + $0x30] sm:$0xff] }
   0x7   :  { %185 = vmatpush.bf16.msra.mxu1 %v548_v3  ;;  %v33_v16 = vpack.c.bf16 %v32_v15, %v32_v15  ;;  %v542_v17 = vld [vmem:[%s743_s3] sm:$0xff]  ;;  %v555_v25 = vld [vmem:[%s748_s5 + $0x28] sm:$0xff]  ;;  %v553_v27 = vld [vmem:[%s748_s5 + $0x18] sm:$0xff] }
   0x8   :  { %v566_v18 = vld [vmem:[%s744_s2] ss:$0 sm:$0xff]  ;;  %v552_v28 = vld [vmem:[%s748_s5 + $0x10] sm:$0xff]  ;;  %v551_v29 = vld [vmem:[%s748_s5 + $0x8] sm:$0xff] }
   0x9   :  { %v554_v26 = vld [vmem:[%s748_s5 + $0x20] sm:$0xff]  ;;  %v565_v34 = vld [vmem:[%s749_s7 + $0x38] sm:$0xff]  ;;  %v564_v36 = vld [vmem:[%s749_s7 + $0x30] sm:$0xff] }
   0xa   :  { %104 = vmatpush.bf16.msra.mxu0 %v539_v4  ;;  %286 = vmatpush.bf16.msra.mxu2 %v556_v24  ;;  %v550_v30 = vld [vmem:[%s748_s5] sm:$0xff]  ;;  %v563_v37 = vld [vmem:[%s749_s7 + $0x28] sm:$0xff]  ;;  %v561_v42 = vld [vmem:[%s749_s7 + $0x18] sm:$0xff] }
   0xb   :  { %186 = vmatpush.bf16.msra.mxu1 %v547_v5  ;;  %v567_v31 = vld [vmem:[%s746_s4] ss:$0 sm:$0xff]  ;;  %367 = vmatpush.bf16.msra.mxu3 %v565_v34  ;;  %v560_v43 = vld [vmem:[%s749_s7 + $0x10] sm:$0xff]  ;;  %v559_v47 = vld [vmem:[%s749_s7 + $0x8] sm:$0xff] }
   0xc   :  { %v562_v40 = vld [vmem:[%s749_s7 + $0x20] sm:$0xff] }
   0xd   :  { %v558_v56 = vld [vmem:[%s749_s7] sm:$0xff] }
   0xe   :  { %105 = vmatpush.bf16.msra.mxu0 %v538_v6  ;;  %287 = vmatpush.bf16.msra.mxu2 %v555_v25  ;;  %v568_v57 = vld [vmem:[%s747_s6] ss:$0 sm:$0xff] }
   0xf   :  { %187 = vmatpush.bf16.msra.mxu1 %v546_v7  ;;  %368 = vmatpush.bf16.msra.mxu3 %v564_v36  ;;  %v569_v62 = vld [vmem:[%s750_s8] ss:$0 sm:$0xff] }
  0x12   :  { %106 = vmatpush.bf16.msra.mxu0 %v537_v8  ;;  %288 = vmatpush.bf16.msra.mxu2 %v554_v26 }
  0x13   :  { %188 = vmatpush.bf16.msra.mxu1 %v545_v9  ;;  %369 = vmatpush.bf16.msra.mxu3 %v563_v37 }
  0x16   :  { %107 = vmatpush.bf16.msra.mxu0 %v536_v10  ;;  %289 = vmatpush.bf16.msra.mxu2 %v553_v27 }
  0x17   :  { %189 = vmatpush.bf16.msra.mxu1 %v544_v11  ;;  %370 = vmatpush.bf16.msra.mxu3 %v562_v40 }
  0x1a   :  { %108 = vmatpush.bf16.msra.mxu0 %v535_v12  ;;  %290 = vmatpush.bf16.msra.mxu2 %v552_v28 }
  0x1b   :  { %190 = vmatpush.bf16.msra.mxu1 %v543_v13  ;;  %371 = vmatpush.bf16.msra.mxu3 %v561_v42 }
  0x1e   :  { %109 = vmatpush.bf16.msra.mxu0 %v534_v14  ;;  %291 = vmatpush.bf16.msra.mxu2 %v551_v29 }
  0x1f   :  { %191 = vmatpush.bf16.msra.mxu1 %v542_v17  ;;  %372 = vmatpush.bf16.msra.mxu3 %v560_v43 }
  0x21   :  { %110 = vmatmul.bf16.vlgmr.msra.gmra.mxu0 %v33_v16 }
  0x22   :  { %292 = vmatpush.bf16.msra.mxu2 %v550_v30 }
  0x23   :  { %373 = vmatpush.bf16.msra.mxu3 %v559_v47 }
  0x27   :  { %374 = vmatpush.bf16.msra.mxu3 %v558_v56 }
  0x9e   :  { %v111_v19 = vpop.f32.mrf.mxu0 }
  0x9f   :  { %v112_v20 = vadd.f32 %v566_v18, %v111_v19 }
  0xa1   :  { %v115_v21 = vpack.c.bf16 %v112_v20, %v112_v20 }
  0xa3   :  { %192 = vmatmul.bf16.vlgmr.msra.gmra.mxu1 %v115_v21 }
  0xa6   :  { %v113_v22 = vpop.f32.mrf.mxu0 }
 0x120   :  { %v193_v32 = vpop.f32.mrf.mxu1 }
 0x121   :  { %v194_v33 = vadd.f32 %v567_v31, %v193_v32 }
 0x123   :  { %v468_v35 = vmul.f32 -1.442695, %v194_v33 }
 0x125   :  { %570 = vpow2.f32 %v468_v35 }
 0x128   :  { %v195_v38 = vpop.f32.mrf.mxu1 }
 0x12b   :  { %v571_v39 = vpop.eup %570 }
 0x12c   :  { %v200_v41 = vadd.f32 1.0, %v571_v39 }
 0x12e   :  { %572 = vrcp.f32 %v200_v41  ;;  %v212_v48 = vand.u32 2147483648, %v200_v41  ;;  %v210_v50 = vand.u32 2147483647, %v200_v41  ;;  %vm206_vm1 = vweird.f32 %v200_v41 }
 0x130   :  { %v213_v52 = vor.u32 1.1754944e-38, %v212_v48  ;;  %vm211_vm3 = vcmp.eq.f32.partialorder %v210_v50, 8.507059e+37 }
 0x134   :  { %v573_v44 = vpop.eup %572 }
 0x135   :  { %v202_v45 = vmul.f32 %v573_v44, %v200_v41  ;;  %vm207_vm0 = vweird.f32 %v573_v44 }
 0x136   :  { %vm208_vm2 = vmor %vm206_vm1, %vm207_vm0 }
 0x137   :  { %v203_v46 = vsub.f32 1.0, %v202_v45 }
 0x139   :  { %v204_v49 = vmul.f32 %v573_v44, %v203_v46 }
 0x13b   :  { %v205_v51 = vadd.f32 %v573_v44, %v204_v49 }
 0x13d   :  { %v209_v53 = vsel %vm208_vm2, %v573_v44, %v205_v51 }
 0x13e   :  { %v214_v54 = vsel %vm211_vm3, %v213_v52, %v209_v53 }
 0x13f   :  { %v216_v55 = vpack.c.bf16 %v214_v54, %v214_v54 }
 0x141   :  { %293 = vmatmul.bf16.vlgmr.msra.gmra.mxu2 %v216_v55 }
 0x1c4   :  { %v294_v58 = vpop.f32.mrf.mxu2 }
 0x1c5   :  { %v295_v59 = vadd.f32 %v568_v57, %v294_v58 }
 0x1c7   :  { %v298_v60 = vpack.c.bf16 %v295_v59, %v295_v59 }
 0x1c9   :  { %375 = vmatmul.bf16.vlgmr.msra.gmra.mxu3 %v298_v60 }
 0x1cc   :  { %v296_v61 = vpop.f32.mrf.mxu2 }
 0x24c   :  { %v376_v63 = vpop.f32.mrf.mxu3 }
 0x24d   :  { %v377_v0 = vadd.f32 %v569_v62, %v376_v63 }
 0x24f   :  { %v533_v1 = vmul.f32 -1.442695, %v377_v0 }
 0x251   :  { %574 = vpow2.f32 %v533_v1 }
 0x254   :  { %v378_v2 = vpop.f32.mrf.mxu3 }
 0x257   :  { %v575_v3 = vpop.eup %574 }
 0x258   :  { %v383_v4 = vadd.f32 1.0, %v575_v3 }
 0x25a   :  { %576 = vrcp.f32 %v383_v4  ;;  %v395_v8 = vand.u32 2147483648, %v383_v4  ;;  %v393_v10 = vand.u32 2147483647, %v383_v4  ;;  %vm389_vm5 = vweird.f32 %v383_v4 }
 0x25c   :  { %v396_v12 = vor.u32 1.1754944e-38, %v395_v8  ;;  %vm394_vm7 = vcmp.eq.f32.partialorder %v393_v10, 8.507059e+37 }
 0x260   :  { %v577_v5 = vpop.eup %576 }
 0x261   :  { %v385_v6 = vmul.f32 %v577_v5, %v383_v4  ;;  %vm390_vm4 = vweird.f32 %v577_v5 }
 0x262   :  { %vm391_vm6 = vmor %vm389_vm5, %vm390_vm4 }
 0x263   :  { %v386_v7 = vsub.f32 1.0, %v385_v6 }
 0x265   :  { %v387_v9 = vmul.f32 %v577_v5, %v386_v7 }
 0x267   :  { %v388_v11 = vadd.f32 %v577_v5, %v387_v9 }
 0x269   :  { %v392_v13 = vsel %vm391_vm6, %v577_v5, %v388_v11 }
 0x26a   :  { %v397_v14 = vsel %vm394_vm7, %v396_v12, %v392_v13 }
 0x26b   :  { %399 = vst [vmem:[%s751_s9] sm:$0xff] %v397_v14 }

</bundles_post_ra>
